<compile_context>
chip_gen: v7x
topology: tpu7x:2x2x1
jax: 0.10.0
libtpu: 0.0.40
codegen_flags: <defaults>
</compile_context>

<pallas_src>
import functools

import jax
import jax.numpy as jnp
from jax.experimental import pallas as pl
from jax.experimental.pallas import tpu as pltpu


# Safe on v7x (64 MiB physical VMEM); may be raised toward 96 MiB on v5e/v6e.
_VMEM_LIMIT = 48 * 1024 * 1024


def _pick_tile(dim, target, aligns):
    """Largest tile <= target that divides `dim`, preferring coarse (MXU
    friendly) alignment.  Falls back to the full dim, which is always legal
    (a block equal to the array dim satisfies the (8,128) rule)."""
    if dim <= target:
        return dim
    for align in aligns:
        t = (target // align) * align
        while t >= align:
            if dim % t == 0:
                return t
            t -= align
    return dim


# ---------------------------------------------------------------------------
# Tiled matmul + fused BN/ReLU epilogue.  All 1x1 convs and the fused
# f_value+conv5+bn5 phase-space im2col matmul go through here.
# ---------------------------------------------------------------------------
def _matmul_bn_kernel_single(apply_relu):
    """K fits one block: no accumulator scratch, no init/finish predication."""
    def kernel(x_ref, w_ref, s_ref, t_ref, o_ref):
        y = jnp.dot(x_ref[...], w_ref[...], preferred_element_type=jnp.float32)
        y = y * s_ref[...] + t_ref[...]
        if apply_relu:
            y = jnp.maximum(y, 0.0)
        o_ref[...] = y.astype(o_ref.dtype)
    return kernel


def _matmul_bn_kernel_multi(apply_relu):
    """acc += x @ w over the K grid axis; epilogue y = relu?(acc*s + t)."""
    def kernel(x_ref, w_ref, s_ref, t_ref, o_ref, acc_ref):
        @pl.when(pl.program_id(2) == 0)
        def _init():
            acc_ref[...] = jnp.zeros_like(acc_ref)

        acc_ref[...] += jnp.dot(x_ref[...], w_ref[...],
                                preferred_element_type=jnp.float32)

        @pl.when(pl.program_id(2) == pl.num_programs(2) - 1)
        def _finish():
            y = acc_ref[...] * s_ref[...] + t_ref[...]
            if apply_relu:
                y = jnp.maximum(y, 0.0)
            o_ref[...] = y.astype(o_ref.dtype)
    return kernel


def matmul_bn(x2d, w, scale, shift, *, apply_relu, out_dtype=jnp.bfloat16,
              tm=512, tn=256, tk=512):
    """out = relu?((x @ w) * scale + shift).  bf16 MXU inputs, f32 accumulate.

    Conv bias must already be folded into `shift` (shift = b*scale + bn_shift)."""
    M, K = x2d.shape
    K2, N = w.shape
    assert K == K2
    tm = _pick_tile(M, tm, (256, 128, 8))
    tn = _pick_tile(N, tn, (256, 128))
    tk = _pick_tile(K, tk, (256, 128))
    scale = jnp.asarray(scale, jnp.float32).reshape(1, N)
    shift = jnp.asarray(shift, jnp.float32).reshape(1, N)
    x2d = x2d.astype(jnp.bfloat16)
    w = w.astype(jnp.bfloat16)

    if tk == K:
        return pl.pallas_call(
            _matmul_bn_kernel_single(apply_relu),
            grid=(M // tm, N // tn),
            in_specs=[
                pl.BlockSpec((tm, K), lambda i, j: (i, 0)),
                pl.BlockSpec((K, tn), lambda i, j: (0, j)),
                pl.BlockSpec((1, tn), lambda i, j: (0, j)),
                pl.BlockSpec((1, tn), lambda i, j: (0, j)),
            ],
            out_specs=pl.BlockSpec((tm, tn), lambda i, j: (i, j)),
            out_shape=jax.ShapeDtypeStruct((M, N), out_dtype),
            compiler_params=pltpu.CompilerParams(
                dimension_semantics=("parallel", "parallel"),
                vmem_limit_bytes=_VMEM_LIMIT),
        )(x2d, w, scale, shift)

    return pl.pallas_call(
        _matmul_bn_kernel_multi(apply_relu),
        grid=(M // tm, N // tn, K // tk),
        in_specs=[
            pl.BlockSpec((tm, tk), lambda i, j, k: (i, k)),
            pl.BlockSpec((tk, tn), lambda i, j, k: (k, j)),
            pl.BlockSpec((1, tn), lambda i, j, k: (0, j)),
            pl.BlockSpec((1, tn), lambda i, j, k: (0, j)),
        ],
        out_specs=pl.BlockSpec((tm, tn), lambda i, j, k: (i, j)),
        out_shape=jax.ShapeDtypeStruct((M, N), out_dtype),
        scratch_shapes=[pltpu.VMEM((tm, tn), jnp.float32)],
        compiler_params=pltpu.CompilerParams(
            dimension_semantics=("parallel", "parallel", "arbitrary"),
            vmem_limit_bytes=_VMEM_LIMIT),
    )(x2d, w, scale, shift)


# ---------------------------------------------------------------------------
# Flash attention (softmax(scale * q @ k^T) @ v) fused with the 1x1 conv W.
# Key arrives pre-transposed as (B, Ck, Nk) -> MXU-native, no in-kernel
# transpose.  Online softmax over the Nk grid axis bounds VMEM.
# ---------------------------------------------------------------------------
def _attention_kernel(q_ref, kt_ref, v_ref, ww_ref, wb_ref, o_ref,
                      m_ref, l_ref, acc_ref, *, scale):
    nk = pl.program_id(2)

    @pl.when(nk == 0)
    def _init():
        m_ref[...] = jnp.full(m_ref.shape, -jnp.inf, jnp.float32)
        l_ref[...] = jnp.zeros(l_ref.shape, jnp.float32)
        acc_ref[...] = jnp.zeros(acc_ref.shape, jnp.float32)

    # scores = scale * q (tq, Ck) @ kT (Ck, tnk)
    s = jnp.dot(q_ref[0], kt_ref[0], preferred_element_type=jnp.float32) * scale
    m_prev = m_ref[...]
    m_new = jnp.maximum(m_prev, jnp.max(s, axis=-1, keepdims=True))
    alpha = jnp.exp(m_prev - m_new)
    p = jnp.exp(s - m_new)                                   # unnormalized probs
    l_ref[...] = alpha * l_ref[...] + jnp.sum(p, axis=-1, keepdims=True)
    acc_ref[...] = alpha * acc_ref[...] + jnp.dot(
        p.astype(jnp.bfloat16), v_ref[0], preferred_element_type=jnp.float32)
    m_ref[...] = m_new

    @pl.when(nk == pl.num_programs(2) - 1)
    def _finish():
        # Deferred softmax normalization: tq reciprocals + tq*Cv multiplies
        # instead of tq*Nk multiplies on the score tile.
        ctx = acc_ref[...] * pl.reciprocal(l_ref[...], approx=False)
        # fused epilogue: 1x1 conv self.W (weights stay resident in VMEM)
        out = jnp.dot(ctx.astype(jnp.bfloat16), ww_ref[...],
                      preferred_element_type=jnp.float32) + wb_ref[...]
        o_ref[0] = out.astype(o_ref.dtype)


def attention_wproj(q, key_t, v, w_w, w_b, *, scale, tq=256, tnk=512):
    B, Nq, Ck = q.shape
    _, Ck2, Nk = key_t.shape
    _, Nv, Cv = v.shape
    assert Ck == Ck2
    assert Nk == Nv, "low_feats spatial must match conv5 output spatial"
    Cout = w_w.shape[1]
    tq = _pick_tile(Nq, tq, (128, 8))
    tnk = _pick_tile(Nk, tnk, (256, 128))
    w_w = jnp.asarray(w_w, jnp.bfloat16)
    w_b = jnp.asarray(w_b, jnp.float32).reshape(1, Cout)
    return pl.pallas_call(
        functools.partial(_attention_kernel, scale=scale),
        grid=(B, Nq // tq, Nk // tnk),
        in_specs=[
            pl.BlockSpec((1, tq, Ck), lambda b, i, k: (b, i, 0)),
            pl.BlockSpec((1, Ck, tnk), lambda b, i, k: (b, 0, k)),
            pl.BlockSpec((1, tnk, Cv), lambda b, i, k: (b, k, 0)),
            pl.BlockSpec((Cv, Cout), lambda b, i, k: (0, 0)),
            pl.BlockSpec((1, Cout), lambda b, i, k: (0, 0)),
        ],
        out_specs=pl.BlockSpec((1, tq, Cout), lambda b, i, k: (b, i, 0)),
        out_shape=jax.ShapeDtypeStruct((B, Nq, Cout), jnp.bfloat16),
        scratch_shapes=[pltpu.VMEM((tq, 1), jnp.float32),
                        pltpu.VMEM((tq, 1), jnp.float32),
                        pltpu.VMEM((tq, Cv), jnp.float32)],
        compiler_params=pltpu.CompilerParams(
            dimension_semantics=("parallel", "parallel", "arbitrary"),
            vmem_limit_bytes=_VMEM_LIMIT),
    )(q.astype(jnp.bfloat16), key_t.astype(jnp.bfloat16), v.astype(jnp.bfloat16),
      w_w, w_b)


# ---------------------------------------------------------------------------
# Glue (plain JAX): BN folding, weight composition, layout.
# ---------------------------------------------------------------------------
def _bn_fold(gamma, beta, mean, var, eps=1e-5):
    s = gamma / jnp.sqrt(var + eps)
    return s, beta - mean * s


def self_attention_block(low_low_feat, low_feats, high_feats, p,
                         key_channels=256, value_channels=256,
                         out_channels=256):
    """Inputs are NCHW, output is NCHW (matches the PyTorch module)."""
    B, c, h, w = high_feats.shape

    ll = jnp.transpose(low_low_feat, (0, 2, 3, 1)).astype(jnp.bfloat16)   # NHWC
    lo = jnp.transpose(low_feats, (0, 2, 3, 1)).astype(jnp.bfloat16)
    hi = jnp.transpose(high_feats, (0, 2, 3, 1)).astype(jnp.bfloat16)

    # ---- value path: value = bn5(conv5(self.b(f_value(x))))  (self.b == id) ----
    # f_value is composed into the 3x3 taps: W_eff[t] = [Wv; b_v] @ W5[t]; the
    # extra indicator channel (1 inside the image, 0 in the zero-pad border)
    # makes the composition exact (padded taps contribute 0, not f_value(0)).
    Bll, Hll, Wll, Cll = ll.shape
    Ho = (Hll + 2 - 3) // 2 + 1
    Wo = (Wll + 2 - 3) // 2 + 1
    ones = jnp.ones((Bll, Hll, Wll, 1), jnp.bfloat16)
    x_aug = jnp.concatenate([ll, ones], axis=-1)                         # (B,H,W,Cll+1)
    xp = jnp.pad(x_aug, ((0, 0), (1, 1), (1, 1), (0, 0)))
    taps = [xp[:, kh:kh + 2 * Ho:2, kw:kw + 2 * Wo:2, :]
            for kh in range(3) for kw in range(3)]
    im2col = jnp.concatenate(taps, axis=-1)                              # (B,Ho,Wo,9*(Cll+1))

    wv_aug = jnp.concatenate(
        [jnp.asarray(p["f_value_w"], jnp.float32),
         jnp.asarray(p["f_value_b"], jnp.float32)[None, :]], axis=0)     # (Cll+1, Cv)
    w5 = jnp.asarray(p["conv5_w"], jnp.float32).reshape(9, value_channels, -1)
    cout5 = w5.shape[-1]
    w_eff = jnp.einsum("ac,tcd->tad", wv_aug, w5).reshape(9 * (Cll + 1), cout5)

    s5, t5 = _bn_fold(p["bn5_gamma"], p["bn5_beta"], p["bn5_mean"], p["bn5_var"])
    t5 = p["conv5_b"] * s5 + t5                                          # conv5 bias folded once
    value = matmul_bn(im2col.reshape(-1, 9 * (Cll + 1)), w_eff, s5, t5,
                      apply_relu=False, out_dtype=jnp.bfloat16)
    value = value.reshape(B, Ho * Wo, cout5)                             # (B, Nv, 256)

    # ---- query = f_query(high_feats).view(B, Ck, -1).permute(0, 2, 1) ----
    sq, tq_ = _bn_fold(p["q_bn_gamma"], p["q_bn_beta"], p["q_bn_mean"], p["q_bn_var"])
    tq_ = p["f_query_b"] * sq + tq_
    q = matmul_bn(hi.reshape(-1, c), p["f_query_w"], sq, tq_,
                  apply_relu=True, out_dtype=jnp.bfloat16)
    query = q.reshape(B, h * w, key_channels)                            # (B, Nq, Ck)

    # ---- key = self.b(f_key(low_feats))  (self.b == identity) ----
    Blo, Hlo, Wlo, Clo = lo.shape
    sk, tk_ = _bn_fold(p["k_bn_gamma"], p["k_bn_beta"], p["k_bn_mean"], p["k_bn_var"])
    tk_ = p["f_key_b"] * sk + tk_
    k = matmul_bn(lo.reshape(-1, Clo), p["f_key_w"], sk, tk_,
                  apply_relu=True, out_dtype=jnp.bfloat16)
    # Pre-transpose to (B, Ck, Nk): cheap one-time relayout, removes the
    # per-q-tile XLU transpose inside the attention kernel.
    key_t = jnp.swapaxes(k.reshape(B, Hlo * Wlo, key_channels), 1, 2)

    # sim = softmax(Ck^-0.5 * q @ k); context = sim @ value; out = W(context)
    out = attention_wproj(query, key_t, value, p["W_w"], p["W_b"],
                          scale=float(key_channels) ** (-0.5))
    out = out.reshape(B, h, w, out_channels).transpose(0, 3, 1, 2)       # NCHW
    return out.astype(jnp.float32)


# ---------------------------------------------------------------------------
# Deterministic setup + run
# ---------------------------------------------------------------------------
if __name__ == "__main__":
    B = 2
    low_in_channels = 32
    high_in_channels = 256    # conv5 / bn5 hard-code 256 channels -> c must be 256
    key_channels = 256
    value_channels = 256
    out_channels = high_in_channels
    Hh = Wh = 8               # high_feats spatial  -> Nq = 64
    Hl = Wl = 8               # low_feats  spatial  -> Nk = 64
    Hll = Wll = 16            # low_low    spatial  -> conv5 stride-2 -> 8x8 -> Nv = 64

    root = jax.random.PRNGKey(0)
    keys = jax.random.split(root, 24)

    def nrm(k, shape, s=0.05):
        return s * jax.random.normal(k, shape, jnp.float32)

    low_low_feat = nrm(keys[0], (B, low_in_channels, Hll, Wll), 1.0)
    low_feats = nrm(keys[1], (B, low_in_channels, Hl, Wl), 1.0)
    high_feats = nrm(keys[2], (B, high_in_channels, Hh, Wh), 1.0)

    conv5_w = nrm(keys[3], (3, 3, value_channels, 256))   # (kh, kw, cin, cout)
    params = {
        # f_value: Conv2d(low_in, value_channels, 1)
        "f_value_w": nrm(keys[4], (low_in_channels, value_channels)),
        "f_value_b": nrm(keys[5], (value_channels,)),
        # f_key: Conv2d(low_in, key_channels, 1) + BN + ReLU
        "f_key_w": nrm(keys[6], (low_in_channels, key_channels)),
        "f_key_b": nrm(keys[7], (key_channels,)),
        "k_bn_gamma": 1.0 + nrm(keys[8], (key_channels,)),
        "k_bn_beta": nrm(keys[9], (key_channels,)),
        "k_bn_mean": nrm(keys[10], (key_channels,)),
        "k_bn_var": 1.0 + jnp.abs(nrm(keys[11], (key_channels,))),
        # f_query: Conv2d(high_in, key_channels, 1) + BN + ReLU
        "f_query_w": nrm(keys[12], (high_in_channels, key_channels)),
        "f_query_b": nrm(keys[13], (key_channels,)),
        "q_bn_gamma": 1.0 + nrm(keys[14], (key_channels,)),
        "q_bn_beta": nrm(keys[15], (key_channels,)),
        "q_bn_mean": nrm(keys[16], (key_channels,)),
        "q_bn_var": 1.0 + jnp.abs(nrm(keys[17], (key_channels,))),
        # conv5: Conv2d(256, 256, 3, stride=2, padding=1), flattened (kh,kw,cin)-major
        "conv5_w": conv5_w.reshape(9 * value_channels, 256),
        "conv5_b": nrm(keys[18], (256,)),
        # bn5
        "bn5_gamma": 1.0 + nrm(keys[19], (256,)),
        "bn5_beta": nrm(keys[20], (256,)),
        "bn5_mean": nrm(keys[21], (256,)),
        "bn5_var": 1.0 + jnp.abs(nrm(keys[22], (256,))),
        # W: zero-initialized per __init__ (nn.init.constant_)
        "W_w": jnp.zeros((value_channels, out_channels), jnp.float32),
        "W_b": jnp.zeros((out_channels,), jnp.float32),
    }

    out = self_attention_block(low_low_feat, low_feats, high_feats, params,
                               key_channels=key_channels,
                               value_channels=value_channels,
                               out_channels=out_channels)
    out = jax.block_until_ready(out)
    assert out.shape == (B, out_channels, Hh, Wh), out.shape
    print("KERNEL_OK")
</pallas_src>

<mosaic_0001>
module attributes {stable_mosaic.version = 11 : i64} {
  func.func @kernel(%arg0: i32, %arg1: i32, %arg2: memref<128x297xbf16, #tpu.memory_space<vmem>>, %arg3: memref<297x256xbf16, #tpu.memory_space<vmem>>, %arg4: memref<1x256xf32, #tpu.memory_space<vmem>>, %arg5: memref<1x256xf32, #tpu.memory_space<vmem>>, %arg6: memref<128x256xbf16, #tpu.memory_space<vmem>>) attributes {dimension_semantics = [#tpu.dimension_semantics<parallel>, #tpu.dimension_semantics<parallel>], iteration_bounds = array<i64: 1, 1>, scalar_prefetch = 0 : i64, scratch_operands = 0 : i64, tpu.core_type = #tpu.core_type<tc>, window_params = [{transform_indices = @transform_0, window_bounds = array<i64: 128, 297>}, {transform_indices = @transform_1, window_bounds = array<i64: 297, 256>}, {transform_indices = @transform_2, window_bounds = array<i64: 1, 256>}, {transform_indices = @transform_3, window_bounds = array<i64: 1, 256>}, {transform_indices = @transform_4, window_bounds = array<i64: 128, 256>}]} {
    %c0 = arith.constant 0 : index
    %c0_0 = arith.constant 0 : index
    %0 = vector.load %arg2[%c0, %c0_0] : memref<128x297xbf16, #tpu.memory_space<vmem>>, vector<128x297xbf16>
    %c0_1 = arith.constant 0 : index
    %c0_2 = arith.constant 0 : index
    %1 = vector.load %arg3[%c0_1, %c0_2] : memref<297x256xbf16, #tpu.memory_space<vmem>>, vector<297x256xbf16>
    %cst = arith.constant dense<0.000000e+00> : vector<128x256xf32>
    %2 = tpu.matmul %0, %1, %cst {dimension_numbers = #tpu.dot_dimension_numbers<[1], [0], [0], [1], [0, 0, 1, 1], [], []>} : vector<128x297xbf16>, vector<297x256xbf16>, vector<128x256xf32> -> vector<128x256xf32>
    %c0_3 = arith.constant 0 : index
    %c0_4 = arith.constant 0 : index
    %3 = vector.load %arg4[%c0_3, %c0_4] : memref<1x256xf32, #tpu.memory_space<vmem>>, vector<1x256xf32>
    %4 = vector.broadcast %3 : vector<1x256xf32> to vector<128x256xf32>
    %5 = arith.mulf %2, %4 : vector<128x256xf32>
    %c0_5 = arith.constant 0 : index
    %c0_6 = arith.constant 0 : index
    %6 = vector.load %arg5[%c0_5, %c0_6] : memref<1x256xf32, #tpu.memory_space<vmem>>, vector<1x256xf32>
    %7 = vector.broadcast %6 : vector<1x256xf32> to vector<128x256xf32>
    %8 = arith.addf %5, %7 : vector<128x256xf32>
    %9 = arith.truncf %8 : vector<128x256xf32> to vector<128x256xbf16>
    %c0_7 = arith.constant 0 : index
    %c0_8 = arith.constant 0 : index
    %10 = vector.load %arg6[%c0_7, %c0_8] : memref<128x256xbf16, #tpu.memory_space<vmem>>, vector<128x256xbf16>
    tpu.vector_store %arg6[%c0_7, %c0_8], %9 {strides = array<i32>} : memref<128x256xbf16, #tpu.memory_space<vmem>>, vector<128x256xbf16>,
    return
  }
  func.func @transform_0(%arg0: i32, %arg1: i32) -> (i32, i32) {
    %c0_i32 = arith.constant 0 : i32
    %c0_i32_0 = arith.constant 0 : i32
    return %arg0, %c0_i32 : i32, i32
  }
  func.func @transform_1(%arg0: i32, %arg1: i32) -> (i32, i32) {
    %c0_i32 = arith.constant 0 : i32
    %c0_i32_0 = arith.constant 0 : i32
    return %c0_i32, %arg1 : i32, i32
  }
  func.func @transform_2(%arg0: i32, %arg1: i32) -> (i32, i32) {
    %c0_i32 = arith.constant 0 : i32
    %c0_i32_0 = arith.constant 0 : i32
    return %c0_i32, %arg1 : i32, i32
  }
  func.func @transform_3(%arg0: i32, %arg1: i32) -> (i32, i32) {
    %c0_i32 = arith.constant 0 : i32
    %c0_i32_0 = arith.constant 0 : i32
    return %c0_i32, %arg1 : i32, i32
  }
  func.func @transform_4(%arg0: i32, %arg1: i32) -> (i32, i32) {
    %c0_i32 = arith.constant 0 : i32
    return %arg0, %arg1 : i32, i32
  }
}

</mosaic_0001>

<bundles_post_ra>
// kernel: tpu_custom_call.1
= control target key start
LH: loop header
LB: loop body
LE: loop exit
PB: predicated region body
PF: predicated region fallthrough
CT: control target
= control target key end

     0   :  { %v1126_v3 = vmov 0   ;;  %vm422_vm0 = vcmask 1043456   ;;  %vm423_vm1 = vcmask 1044480   ;;  %v1127_v16 = vmov 65535   ;;  %s1520_s0 = inlined_call_operand.vmem [shape: bf16[128,297], index: 0, kind: input, shape index: {}]   ;;  %s1521_s1 = inlined_call_operand.vmem [shape: bf16[297,256], index: 1, kind: input, shape index: {}]   ;;  %s1522_s2 = inlined_call_operand.vmem [shape: f32[1,256], index: 2, kind: input, shape index: {}]   ;;  %s1523_s3 = inlined_call_operand.vmem [shape: f32[1,256], index: 3, kind: input, shape index: {}]   ;;  %s1524_s4 = inlined_call_operand.hbm [shape: bf16[128,256], index: 4, kind: output, shape index: {}]  }
   0x1   :  { %v1013_v0 = vld [vmem:[%s1521_s1 + $0x4] ss:$8 sps:$4 sm:$0xff]   ;;  %v1015_v1 = vld [vmem:[%s1521_s1] ss:$8 sps:$4 sm:$0xff]   ;;  %v1016_v2 = vld [vmem:[%s1521_s1 + $0x14] ss:$8 sps:$4 sm:$0xff]   ;;  %577 = vmatprep.mubr.bf16.mxu0 %v1126_v3 }
   0x2   :  { %432 = vmatprep.subr.bf16.mxu1 %v1013_v0  ;;  %v1018_v4 = vld [vmem:[%s1521_s1 + $0x10] ss:$8 sps:$4 sm:$0xff]   ;;  %v1019_v5 = vld [vmem:[%s1521_s1 + $0x24] ss:$8 sps:$4 sm:$0xff]   ;;  %v1021_v6 = vld [vmem:[%s1521_s1 + $0x20] ss:$8 sps:$4 sm:$0xff]  }
   0x3   :  { %433 = vmatpush1.bf16.msra.mxu1 %v1015_v1  ;;  %v1022_v7 = vld [vmem:[%s1521_s1 + $0x34] ss:$8 sps:$4 sm:$0xff]   ;;  %v1024_v8 = vld [vmem:[%s1521_s1 + $0x30] ss:$8 sps:$4 sm:$0xff]   ;;  %v1025_v9 = vld [vmem:[%s1521_s1 + $0x44] ss:$8 sps:$4 sm:$0xff]  }
   0x4   :  { %434 = vmatprep.subr.bf16.mxu1 %v1016_v2  ;;  %v1027_v10 = vld [vmem:[%s1521_s1 + $0x40] ss:$8 sps:$4 sm:$0xff]   ;;  %v1028_v11 = vld [vmem:[%s1521_s1 + $0x54] ss:$8 sps:$4 sm:$0xff]   ;;  %v1052_v12 = vld [vmem:[%s1521_s1 + $0x104] ss:$8 sps:$4 sm:$0xff]  }
   0x5   :  { %v1054_v13 = vld [vmem:[%s1521_s1 + $0x100] ss:$8 sps:$4 sm:$0xff]   ;;  %v1030_v14 = vld [vmem:[%s1521_s1 + $0x50] ss:$8 sps:$4 sm:$0xff]   ;;  %v1031_v15 = vld [vmem:[%s1521_s1 + $0x64] ss:$8 sps:$4 sm:$0xff]   ;;  %545 = vmatprep.subr.bf16.mxu0 %v1052_v12 }
   0x6   :  { %v424_v17 = vsel %vm422_vm0, 4294967295, %v1127_v16  ;;  %v1058_v18 = vld [vmem:[%s1521_s1 + $0x114] ss:$8 sps:$4 sm:$0xff]   ;;  %546 = vmatpush1.bf16.msra.mxu0 %v1054_v13  ;;  %v1060_v19 = vld [vmem:[%s1521_s1 + $0x110] ss:$8 sps:$4 sm:$0xff]   ;;  %vm397_vm2 = vcmask 334848  }
   0x7   :  { %435 = vmatpush1.bf16.msra.mxu1 %v1018_v4  ;;  %v1033_v20 = vld [vmem:[%s1521_s1 + $0x60] ss:$8 sps:$4 sm:$0xff]   ;;  %547 = vmatprep.subr.bf16.mxu0 %v1058_v18  ;;  %v425_v21 = vsel %vm423_vm1, %v424_v17, 0  ;;  %v1064_v22 = vld [vmem:[%s1521_s1 + $0x124] ss:$8 sps:$4 sm:$0x1f]  }
   0x8   :  { %436 = vmatprep.subr.bf16.mxu1 %v1019_v5  ;;  %v1034_v23 = vld [vmem:[%s1521_s1 + $0x74] ss:$8 sps:$4 sm:$0xff]   ;;  %v1066_v24 = vld [vmem:[%s1521_s1 + $0x120] ss:$8 sps:$4 sm:$0x1f]   ;;  %v430_v25 = vand.u32 %v1064_v22, %v425_v21 }
   0x9   :  { %v1036_v26 = vld [vmem:[%s1521_s1 + $0x70] ss:$8 sps:$4 sm:$0xff]   ;;  %v427_v27 = vand.u32 %v1066_v24, %v425_v21  ;;  %v1037_v28 = vld [vmem:[%s1521_s1 + $0x84] ss:$8 sps:$4 sm:$0xff]   ;;  %v1070_v30 = vld [vmem:[%s1520_s0 + $0x8] ss:$12 sps:$4 sm:$0xff]  }
   0xa   :  { %548 = vmatpush1.bf16.msra.mxu0 %v1060_v19  ;;  %v1073_v29 = vld [vmem:[%s1520_s0 + $0x4] ss:$12 sps:$4 sm:$0xff]   ;;  %v1039_v31 = vld [vmem:[%s1521_s1 + $0x80] ss:$8 sps:$4 sm:$0xff]   ;;  %v1040_v32 = vld [vmem:[%s1521_s1 + $0x94] ss:$8 sps:$4 sm:$0xff]  }
   0xb   :  { %437 = vmatpush1.bf16.msra.mxu1 %v1021_v6  ;;  %549 = vmatprep.subr.bf16.mxu0 %v430_v25  ;;  %v1042_v33 = vld [vmem:[%s1521_s1 + $0x90] ss:$8 sps:$4 sm:$0xff]   ;;  %v1043_v34 = vld [vmem:[%s1521_s1 + $0xa4] ss:$8 sps:$4 sm:$0xff]   ;;  %v1045_v36 = vld [vmem:[%s1521_s1 + $0xa0] ss:$8 sps:$4 sm:$0xff]  }
   0xc   :  { %438 = vmatprep.subr.bf16.mxu1 %v1022_v7  ;;  %464 = vmatprep.mubr.bf16.mxu1 %v1073_v29  ;;  %v1074_v35 = vld [vmem:[%s1520_s0 + $0x20] ss:$12 sps:$4 sm:$0xff]   ;;  %v1046_v37 = vld [vmem:[%s1521_s1 + $0xb4] ss:$8 sps:$4 sm:$0xff]   ;;  %v1048_v38 = vld [vmem:[%s1521_s1 + $0xb0] ss:$8 sps:$4 sm:$0xff]  }
   0xd   :  { %v1049_v39 = vld [vmem:[%s1521_s1 + $0xc4] ss:$8 sps:$4 sm:$0xff]  }
   0xe   :  { %550 = vmatpush1.bf16.msra.mxu0 %v427_v27  ;;  %v1078_v40 = vld [vmem:[%s1520_s0 + $0x38] ss:$12 sps:$4 sm:$0xff]  }
   0xf   :  { %439 = vmatpush1.bf16.msra.mxu1 %v1024_v8 }
  0x10   :  { %440 = vmatprep.subr.bf16.mxu1 %v1025_v9 }
  0x11   :  { %936 = vmatmul.mubr.msk.bf16.vlgmr.msra.gmra.mrb[0].mxu0 %vm397_vm2, %v1070_v30 }
  0x12   :  { %587 = vmatprep.mubr.bf16.mxu0 %v1126_v3 }
  0x13   :  { %441 = vmatpush1.bf16.msra.mxu1 %v1027_v10 }
  0x14   :  { %442 = vmatprep.subr.bf16.mxu1 %v1028_v11 }
  0x17   :  { %443 = vmatpush1.bf16.msra.mxu1 %v1030_v14 }
  0x18   :  { %444 = vmatprep.subr.bf16.mxu1 %v1031_v15 }
  0x19   :  { %937 = vmatmul.mubr.msk.bf16.gmra.mrb[4].mxu0 %vm397_vm2, %v1074_v35 }
  0x1a   :  { %597 = vmatprep.mubr.bf16.mxu0 %v1126_v3 }
  0x1b   :  { %445 = vmatpush1.bf16.msra.mxu1 %v1033_v20 }
  0x1c   :  { %446 = vmatprep.subr.bf16.mxu1 %v1034_v23 }
  0x1f   :  { %447 = vmatpush1.bf16.msra.mxu1 %v1036_v26 }
  0x20   :  { %448 = vmatprep.subr.bf16.mxu1 %v1037_v28 }
  0x23   :  { %449 = vmatpush1.bf16.msra.mxu1 %v1039_v31 }
  0x24   :  { %450 = vmatprep.subr.bf16.mxu1 %v1040_v32 }
  0x27   :  { %451 = vmatpush1.bf16.msra.mxu1 %v1042_v33 }
  0x28   :  { %452 = vmatprep.subr.bf16.mxu1 %v1043_v34 }
  0x2b   :  { %453 = vmatpush1.bf16.msra.mxu1 %v1045_v36 }
  0x2c   :  { %454 = vmatprep.subr.bf16.mxu1 %v1046_v37 }
  0x2d   :  { %9 = vsyncpa [#allocation3], 0  ;;  %v1051_v41 = vld [vmem:[%s1521_s1 + $0xc0] ss:$8 sps:$4 sm:$0xff]   ;;  %v1055_v42 = vld [vmem:[%s1521_s1 + $0xd4] ss:$8 sps:$4 sm:$0xff]   ;;  %938 = vmatmul.mubr.msk.bf16.gmra.mrb[8].mxu0 %vm397_vm2, %v1078_v40  ;;  %v660_v16 = vlaneseq }
  0x2e   :  { %607 = vmatprep.mubr.bf16.mxu0 %v1126_v3  ;;  %v1057_v43 = vld [vmem:[%s1521_s1 + $0xd0] ss:$8 sps:$4 sm:$0xff]   ;;  %v1061_v44 = vld [vmem:[%s1521_s1 + $0xe4] ss:$8 sps:$4 sm:$0xff]   ;;  %v1063_v46 = vld [vmem:[%s1521_s1 + $0xe0] ss:$8 sps:$4 sm:$0xff]  }
  0x2f   :  { %455 = vmatpush1.bf16.msra.mxu1 %v1048_v38  ;;  %v1082_v45 = vld [vmem:[%s1520_s0 + $0x50] ss:$12 sps:$4 sm:$0xff]   ;;  %v1086_v49 = vld [vmem:[%s1520_s0 + $0x68] ss:$12 sps:$4 sm:$0xff]   ;;  %v1071_v50 = vld [vmem:[%s1520_s0] ss:$12 sps:$4 sm:$0xff]  }
  0x30   :  { %456 = vmatprep.subr.bf16.mxu1 %v1049_v39  ;;  %v1067_v47 = vld [vmem:[%s1521_s1 + $0xf4] ss:$8 sps:$4 sm:$0xff]   ;;  %v1069_v48 = vld [vmem:[%s1521_s1 + $0xf0] ss:$8 sps:$4 sm:$0xff]   ;;  %v1090_v52 = vld [vmem:[%s1520_s0 + $0x80] ss:$12 sps:$4 sm:$0xff]  }
  0x31   :  { %v1075_v51 = vld [vmem:[%s1520_s0 + $0x1c] ss:$12 sps:$4 sm:$0xff]   ;;  %v1077_v53 = vld [vmem:[%s1520_s0 + $0x18] ss:$12 sps:$4 sm:$0xff]   ;;  %v1079_v54 = vld [vmem:[%s1520_s0 + $0x34] ss:$12 sps:$4 sm:$0xff]  }
  0x32   :  { %v1094_v55 = vld [vmem:[%s1520_s0 + $0x98] ss:$12 sps:$4 sm:$0xff]   ;;  %v1081_v56 = vld [vmem:[%s1520_s0 + $0x30] ss:$12 sps:$4 sm:$0xff]   ;;  %v1085_v59 = vld [vmem:[%s1520_s0 + $0x48] ss:$12 sps:$4 sm:$0xff]  }
  0x33   :  { %457 = vmatpush1.bf16.msra.mxu1 %v1051_v41  ;;  %v1083_v57 = vld [vmem:[%s1520_s0 + $0x4c] ss:$12 sps:$4 sm:$0xff]   ;;  %v1098_v58 = vld [vmem:[%s1520_s0 + $0xb0] ss:$12 sps:$4 sm:$0xff]   ;;  %v1095_v0 = vld [vmem:[%s1520_s0 + $0x94] ss:$12 sps:$4 sm:$0xff]  }
  0x34   :  { %458 = vmatprep.subr.bf16.mxu1 %v1055_v42  ;;  %v1087_v60 = vld [vmem:[%s1520_s0 + $0x64] ss:$12 sps:$4 sm:$0xff]   ;;  %v1089_v61 = vld [vmem:[%s1520_s0 + $0x60] ss:$12 sps:$4 sm:$0xff]   ;;  %v1091_v62 = vld [vmem:[%s1520_s0 + $0x7c] ss:$12 sps:$4 sm:$0xff]  }
  0x35   :  { %939 = vmatmul.mubr.msk.bf16.gmra.mrb[12].mxu0 %vm397_vm2, %v1082_v45  ;;  %v1093_v63 = vld [vmem:[%s1520_s0 + $0x78] ss:$12 sps:$4 sm:$0xff]   ;;  %v1097_v1 = vld [vmem:[%s1520_s0 + $0x90] ss:$12 sps:$4 sm:$0xff]   ;;  %v661_v18 = vshrl.u32 %v660_v16, 7 }
  0x36   :  { %617 = vmatprep.mubr.bf16.mxu0 %v1126_v3  ;;  %v1099_v2 = vld [vmem:[%s1520_s0 + $0xac] ss:$12 sps:$4 sm:$0xff]   ;;  %v658_v23 = vld [vmem:[%s1522_s2] sm:$0x3]  ;;  %s1128_s2 = smov [#allocation2]  }
  0x37   :  { %459 = vmatpush1.bf16.msra.mxu1 %v1057_v43  ;;  %v662_v22 = vsub.s32 0, %v661_v18  ;;  %v666_v24 = vsub.s32 1, %v661_v18  ;;  %v702_v25 = vld [vmem:[%s1523_s3] sm:$0x3]  ;;  %s863_s3 = sshll.u32 %s1128_s2, 4  ;;  %s864_s3 = int_to_ptr.vmem [resolvable:$true] %s863_s3 }
  0x38   :  { %460 = vmatprep.subr.bf16.mxu1 %v1061_v44  ;;  %s1102_s10 = scalar_lea.vmem %s864_s3, 2048  ;;  %p1107_p1 = scmp.lt.s32.totalorder %s864_s3, %s864_s3 }
  0x39   :  { %v1382_v27 = vrot.slane %v658_v23, %v662_v22  ;;  %v1386_v30 = vrot.slane %v658_v23, %v666_v24  ;;  %v1390_v33 = vrot.slane %v702_v25, %v662_v22  ;;  %v1394_v37 = vrot.slane %v702_v25, %v666_v24  ;;  %p1103_p0 = scmp.ne.s32.totalorder %s864_s3, %s1102_s10  ;;  %p1108_p2 = scmp.lt.s32.totalorder %s1102_s10, %s1102_s10 }
  0x3b   :  { %461 = vmatpush1.bf16.msra.mxu1 %v1063_v46  ;;  %p1109_p3 = por %p1108_p2, %p1107_p1 }
  0x3c   :  { %462 = vmatprep.subr.bf16.mxu1 %v1067_v47 }
  0x3d   :  { %940 = vmatmul.mubr.msk.bf16.gmra.mrb[16].mxu0 %vm397_vm2, %v1086_v49  ;;  %p1110_p4 = pnand %p1109_p3, %p1103_p0 }
  0x3e   :  { %627 = vmatprep.mubr.bf16.mxu0 %v1126_v3 }
  0x3f   :  { %463 = vmatpush1.bf16.msra.mxu1 %v1069_v48 }
  0x42   :  { %465 = vmatmul.mubr.bf16.vlgmr.msra.gmra.mrb[0].mxu1 %v1071_v50 }
  0x43   :  { %474 = vmatprep.mubr.bf16.mxu1 %v1075_v51 }
  0x45   :  { %941 = vmatmul.mubr.msk.bf16.gmra.mrb[20].mxu0 %vm397_vm2, %v1090_v52 }
  0x46   :  { %637 = vmatprep.mubr.bf16.mxu0 %v1126_v3 }
  0x4a   :  { %475 = vmatmul.mubr.bf16.gmra.mrb[4].mxu1 %v1077_v53 }
  0x4b   :  { %484 = vmatprep.mubr.bf16.mxu1 %v1079_v54 }
  0x4d   :  { %942 = vmatmul.mubr.msk.bf16.gmra.mrb[24].mxu0 %vm397_vm2, %v1094_v55 }
  0x4e   :  { %647 = vmatprep.mubr.bf16.mxu0 %v1126_v3  ;;  %v1101_v3 = vld [vmem:[%s1520_s0 + $0xa8] ss:$12 sps:$4 sm:$0xff]  }
  0x52   :  { %485 = vmatmul.mubr.bf16.gmra.mrb[8].mxu1 %v1081_v56 }
  0x53   :  { %494 = vmatprep.mubr.bf16.mxu1 %v1083_v57 }
  0x55   :  { %943 = vmatmul.mubr.msk.bf16.gmra.mrb[28].mxu0 %vm397_vm2, %v1098_v58 }
  0x5a   :  { %495 = vmatmul.mubr.bf16.gmra.mrb[12].mxu1 %v1085_v59 }
  0x5b   :  { %504 = vmatprep.mubr.bf16.mxu1 %v1087_v60 }
  0x62   :  { %505 = vmatmul.mubr.bf16.gmra.mrb[16].mxu1 %v1089_v61 }
  0x63   :  { %514 = vmatprep.mubr.bf16.mxu1 %v1091_v62 }
  0x6a   :  { %515 = vmatmul.mubr.bf16.gmra.mrb[20].mxu1 %v1093_v63 }
  0x6b   :  { %524 = vmatprep.mubr.bf16.mxu1 %v1095_v0 }
  0x72   :  { %525 = vmatmul.mubr.bf16.gmra.mrb[24].mxu1 %v1097_v1 }
  0x73   :  { %534 = vmatprep.mubr.bf16.mxu1 %v1099_v2 }
  0x7a   :  { %535 = vmatmul.mubr.bf16.gmra.mrb[28].mxu1 %v1101_v3 }
  0xe4   :  { %v579_v4 = vpop.f32.mrb[0].mxu0 }
  0xe5   :  { %v581_v5 = vpop.f32.mrb[1].mxu0 }
  0xe6   :  { %v583_v6 = vpop.f32.mrb[2].mxu0 }
  0xe7   :  { %v585_v7 = vpop.f32.mrb[3].mxu0 }
  0xec   :  { %v589_v8 = vpop.f32.mrb[4].mxu0 }
  0xed   :  { %v591_v9 = vpop.f32.mrb[5].mxu0 }
  0xee   :  { %v593_v10 = vpop.f32.mrb[6].mxu0 }
  0xef   :  { %v595_v11 = vpop.f32.mrb[7].mxu0 }
 0x100   :  { %v1358_v12 = vpop.f32.mrb[8].mxu0 }
 0x101   :  { %v1360_v13 = vpop.f32.mrb[9].mxu0 }
 0x102   :  { %v1362_v14 = vpop.f32.mrb[10].mxu0 }
 0x103   :  { %v1364_v15 = vpop.f32.mrb[11].mxu0 }
 0x108   :  { %v1366_v17 = vpop.f32.mrb[12].mxu0 }
 0x109   :  { %v1368_v19 = vpop.f32.mrb[13].mxu0 }
 0x10a   :  { %v1370_v20 = vpop.f32.mrb[14].mxu0 }
 0x10b   :  { %v1372_v21 = vpop.f32.mrb[15].mxu0 }
 0x110   :  { %v1380_v26 = vpop.f32.mrb[16].mxu0 }
 0x111   :  { %v1384_v28 = vpop.f32.mrb[17].mxu0 }
 0x112   :  { %v1388_v31 = vpop.f32.mrb[18].mxu0 }
 0x113   :  { %v1392_v35 = vpop.f32.mrb[19].mxu0 }
 0x115   :  { %v466_v29 = vpop.f32.mrb[0].mxu1 }
 0x116   :  { %v580_v32 = vadd.f32 %v579_v4, %v466_v29  ;;  %v468_v34 = vpop.f32.mrb[1].mxu1 }
 0x117   :  { %v582_v36 = vadd.f32 %v581_v5, %v468_v34  ;;  %v470_v38 = vpop.f32.mrb[2].mxu1 }
 0x118   :  { %v670_v39 = vmul.f32 %v1382_v27, %v580_v32  ;;  %v584_v40 = vadd.f32 %v583_v6, %v470_v38  ;;  %v472_v41 = vpop.f32.mrb[3].mxu1  ;;  %v1402_v48 = vpop.f32.mrb[20].mxu0 }
 0x119   :  { %v671_v42 = vmul.f32 %v1386_v30, %v582_v36  ;;  %v586_v43 = vadd.f32 %v585_v7, %v472_v41  ;;  %v1405_v50 = vpop.f32.mrb[21].mxu0 }
 0x11a   :  { %v714_v44 = vadd.f32 %v1390_v33, %v670_v39  ;;  %v672_v45 = vmul.f32 %v1382_v27, %v584_v40  ;;  %v1408_v54 = vpop.f32.mrb[22].mxu0 }
 0x11b   :  { %v715_v46 = vadd.f32 %v1394_v37, %v671_v42  ;;  %v673_v47 = vmul.f32 %v1386_v30, %v586_v43  ;;  %v1410_v57 = vpop.f32.mrb[23].mxu0 }
 0x11c   :  { %v716_v49 = vadd.f32 %v1390_v33, %v672_v45 }
 0x11d   :  { %v960_v51 = vpack.c.bf16 %v715_v46, %v714_v44  ;;  %v717_v52 = vadd.f32 %v1394_v37, %v673_v47  ;;  %v476_v53 = vpop.f32.mrb[4].mxu1 }
 0x11e   :  { %v590_v55 = vadd.f32 %v589_v8, %v476_v53  ;;  %v478_v56 = vpop.f32.mrb[5].mxu1 }
 0x11f   :  { %842 = vst [vmem:[#allocation2] sm:$0xff] %v960_v51  ;;  %v961_v58 = vpack.c.bf16 %v717_v52, %v716_v49  ;;  %v592_v59 = vadd.f32 %v591_v9, %v478_v56  ;;  %v480_v60 = vpop.f32.mrb[6].mxu1 }
 0x120   :  { %v674_v61 = vmul.f32 %v1382_v27, %v590_v55  ;;  %v594_v62 = vadd.f32 %v593_v10, %v480_v60  ;;  %v482_v63 = vpop.f32.mrb[7].mxu1  ;;  %v1418_v6 = vpop.f32.mrb[24].mxu0 }
 0x121   :  { %843 = vst [vmem:[#allocation2 + $0x8] sm:$0xff] %v961_v58  ;;  %v675_v0 = vmul.f32 %v1386_v30, %v592_v59  ;;  %v596_v1 = vadd.f32 %v595_v11, %v482_v63  ;;  %v1421_v8 = vpop.f32.mrb[25].mxu0 }
 0x122   :  { %v718_v2 = vadd.f32 %v1390_v33, %v674_v61  ;;  %v676_v3 = vmul.f32 %v1382_v27, %v594_v62  ;;  %v1424_v18 = vpop.f32.mrb[26].mxu0 }
 0x123   :  { %v719_v4 = vadd.f32 %v1394_v37, %v675_v0  ;;  %v677_v5 = vmul.f32 %v1386_v30, %v596_v1  ;;  %v1427_v23 = vpop.f32.mrb[27].mxu0 }
 0x124   :  { %v720_v7 = vadd.f32 %v1390_v33, %v676_v3 }
 0x125   :  { %v962_v9 = vpack.c.bf16 %v719_v4, %v718_v2  ;;  %v721_v10 = vadd.f32 %v1394_v37, %v677_v5  ;;  %v486_v16 = vpop.f32.mrb[8].mxu1 }
 0x126   :  { %v600_v11 = vadd.f32 %v1358_v12, %v486_v16  ;;  %v488_v22 = vpop.f32.mrb[9].mxu1 }
 0x127   :  { %844 = vst [vmem:[#allocation2 + $0x10] sm:$0xff] %v962_v9  ;;  %v963_v24 = vpack.c.bf16 %v721_v10, %v720_v7  ;;  %v602_v25 = vadd.f32 %v1360_v13, %v488_v22  ;;  %v490_v29 = vpop.f32.mrb[10].mxu1 }
 0x128   :  { %v678_v32 = vmul.f32 %v1382_v27, %v600_v11  ;;  %v604_v34 = vadd.f32 %v1362_v14, %v490_v29  ;;  %v492_v36 = vpop.f32.mrb[11].mxu1  ;;  %v1438_v13 = vpop.f32.mrb[28].mxu0 }
 0x129   :  { %845 = vst [vmem:[#allocation2 + $0x18] sm:$0xff] %v963_v24  ;;  %v679_v38 = vmul.f32 %v1386_v30, %v602_v25  ;;  %v606_v39 = vadd.f32 %v1364_v15, %v492_v36  ;;  %v1441_v44 = vpop.f32.mrb[29].mxu0 }
 0x12a   :  { %v722_v12 = vadd.f32 %v1390_v33, %v678_v32  ;;  %v680_v40 = vmul.f32 %v1382_v27, %v604_v34  ;;  %v1444_v47 = vpop.f32.mrb[30].mxu0 }
 0x12b   :  { %v723_v41 = vadd.f32 %v1394_v37, %v679_v38  ;;  %v681_v42 = vmul.f32 %v1386_v30, %v606_v39  ;;  %v1447_v51 = vpop.f32.mrb[31].mxu0 }
 0x12c   :  { %v724_v43 = vadd.f32 %v1390_v33, %v680_v40 }
 0x12d   :  { %v964_v14 = vpack.c.bf16 %v723_v41, %v722_v12  ;;  %v725_v45 = vadd.f32 %v1394_v37, %v681_v42  ;;  %v496_v46 = vpop.f32.mrb[12].mxu1 }
 0x12e   :  { %v610_v15 = vadd.f32 %v1366_v17, %v496_v46  ;;  %v498_v49 = vpop.f32.mrb[13].mxu1 }
 0x12f   :  { %846 = vst [vmem:[#allocation2 + $0x20] sm:$0xff] %v964_v14  ;;  %v965_v52 = vpack.c.bf16 %v725_v45, %v724_v43  ;;  %v612_v53 = vadd.f32 %v1368_v19, %v498_v49  ;;  %v500_v55 = vpop.f32.mrb[14].mxu1 }
 0x130   :  { %v682_v56 = vmul.f32 %v1382_v27, %v610_v15  ;;  %v614_v58 = vadd.f32 %v1370_v20, %v500_v55  ;;  %v502_v59 = vpop.f32.mrb[15].mxu1 }
 0x131   :  { %847 = vst [vmem:[#allocation2 + $0x28] sm:$0xff] %v965_v52  ;;  %v683_v60 = vmul.f32 %v1386_v30, %v612_v53  ;;  %v616_v61 = vadd.f32 %v1372_v21, %v502_v59 }
 0x132   :  { %v726_v17 = vadd.f32 %v1390_v33, %v682_v56  ;;  %v684_v62 = vmul.f32 %v1382_v27, %v614_v58 }
 0x133   :  { %v727_v63 = vadd.f32 %v1394_v37, %v683_v60  ;;  %v685_v0 = vmul.f32 %v1386_v30, %v616_v61 }
 0x134   :  { %v728_v19 = vadd.f32 %v1390_v33, %v684_v62 }
 0x135   :  { %v966_v1 = vpack.c.bf16 %v727_v63, %v726_v17  ;;  %v729_v2 = vadd.f32 %v1394_v37, %v685_v0  ;;  %v506_v20 = vpop.f32.mrb[16].mxu1 }
 0x136   :  { %v620_v3 = vadd.f32 %v1380_v26, %v506_v20  ;;  %v508_v4 = vpop.f32.mrb[17].mxu1 }
 0x137   :  { %848 = vst [vmem:[#allocation2 + $0x30] sm:$0xff] %v966_v1  ;;  %v967_v5 = vpack.c.bf16 %v729_v2, %v728_v19  ;;  %v622_v21 = vadd.f32 %v1384_v28, %v508_v4  ;;  %v510_v7 = vpop.f32.mrb[18].mxu1 }
 0x138   :  { %v686_v9 = vmul.f32 %v1382_v27, %v620_v3  ;;  %v624_v10 = vadd.f32 %v1388_v31, %v510_v7  ;;  %v512_v16 = vpop.f32.mrb[19].mxu1 }
 0x139   :  { %849 = vst [vmem:[#allocation2 + $0x38] sm:$0xff] %v967_v5  ;;  %v687_v11 = vmul.f32 %v1386_v30, %v622_v21  ;;  %v626_v22 = vadd.f32 %v1392_v35, %v512_v16 }
 0x13a   :  { %v730_v24 = vadd.f32 %v1390_v33, %v686_v9  ;;  %v688_v26 = vmul.f32 %v1382_v27, %v624_v10 }
 0x13b   :  { %v731_v25 = vadd.f32 %v1394_v37, %v687_v11  ;;  %v689_v29 = vmul.f32 %v1386_v30, %v626_v22 }
 0x13c   :  { %v732_v28 = vadd.f32 %v1390_v33, %v688_v26 }
 0x13d   :  { %v968_v32 = vpack.c.bf16 %v731_v25, %v730_v24  ;;  %v733_v34 = vadd.f32 %v1394_v37, %v689_v29  ;;  %v516_v31 = vpop.f32.mrb[20].mxu1 }
 0x13e   :  { %v630_v36 = vadd.f32 %v1402_v48, %v516_v31  ;;  %v518_v38 = vpop.f32.mrb[21].mxu1 }
 0x13f   :  { %850 = vst [vmem:[#allocation2 + $0x40] sm:$0xff] %v968_v32  ;;  %v969_v39 = vpack.c.bf16 %v733_v34, %v732_v28  ;;  %v632_v35 = vadd.f32 %v1405_v50, %v518_v38  ;;  %v520_v12 = vpop.f32.mrb[22].mxu1 }
 0x140   :  { %v690_v40 = vmul.f32 %v1382_v27, %v630_v36  ;;  %v634_v41 = vadd.f32 %v1408_v54, %v520_v12  ;;  %v522_v42 = vpop.f32.mrb[23].mxu1 }
 0x141   :  { %851 = vst [vmem:[#allocation2 + $0x48] sm:$0xff] %v969_v39  ;;  %v691_v43 = vmul.f32 %v1386_v30, %v632_v35  ;;  %v636_v14 = vadd.f32 %v1410_v57, %v522_v42 }
 0x142   :  { %v734_v45 = vadd.f32 %v1390_v33, %v690_v40  ;;  %v692_v48 = vmul.f32 %v1382_v27, %v634_v41 }
 0x143   :  { %v735_v46 = vadd.f32 %v1394_v37, %v691_v43  ;;  %v693_v15 = vmul.f32 %v1386_v30, %v636_v14 }
 0x144   :  { %v736_v50 = vadd.f32 %v1390_v33, %v692_v48 }
 0x145   :  { %v970_v49 = vpack.c.bf16 %v735_v46, %v734_v45  ;;  %v737_v52 = vadd.f32 %v1394_v37, %v693_v15  ;;  %v526_v54 = vpop.f32.mrb[24].mxu1 }
 0x146   :  { %v640_v53 = vadd.f32 %v1418_v6, %v526_v54  ;;  %v528_v55 = vpop.f32.mrb[25].mxu1 }
 0x147   :  { %852 = vst [vmem:[#allocation2 + $0x50] sm:$0xff] %v970_v49  ;;  %v971_v56 = vpack.c.bf16 %v737_v52, %v736_v50  ;;  %v642_v57 = vadd.f32 %v1421_v8, %v528_v55  ;;  %v530_v58 = vpop.f32.mrb[26].mxu1 }
 0x148   :  { %v694_v59 = vmul.f32 %v1382_v27, %v640_v53  ;;  %v644_v60 = vadd.f32 %v1424_v18, %v530_v58  ;;  %v532_v61 = vpop.f32.mrb[27].mxu1 }
 0x149   :  { %853 = vst [vmem:[#allocation2 + $0x58] sm:$0xff] %v971_v56  ;;  %v695_v17 = vmul.f32 %v1386_v30, %v642_v57  ;;  %v646_v62 = vadd.f32 %v1427_v23, %v532_v61 }
 0x14a   :  { %v738_v63 = vadd.f32 %v1390_v33, %v694_v59  ;;  %v696_v6 = vmul.f32 %v1382_v27, %v644_v60 }
 0x14b   :  { %v739_v0 = vadd.f32 %v1394_v37, %v695_v17  ;;  %v697_v19 = vmul.f32 %v1386_v30, %v646_v62 }
 0x14c   :  { %v740_v8 = vadd.f32 %v1390_v33, %v696_v6 }
 0x14d   :  { %v972_v1 = vpack.c.bf16 %v739_v0, %v738_v63  ;;  %v741_v2 = vadd.f32 %v1394_v37, %v697_v19  ;;  %v536_v18 = vpop.f32.mrb[28].mxu1 }
 0x14e   :  { %v650_v20 = vadd.f32 %v1438_v13, %v536_v18  ;;  %v538_v3 = vpop.f32.mrb[29].mxu1 }
 0x14f   :  { %854 = vst [vmem:[#allocation2 + $0x60] sm:$0xff] %v972_v1  ;;  %v973_v4 = vpack.c.bf16 %v741_v2, %v740_v8  ;;  %v652_v23 = vadd.f32 %v1441_v44, %v538_v3  ;;  %v540_v5 = vpop.f32.mrb[30].mxu1 }
 0x150   :  { %v698_v21 = vmul.f32 %v1382_v27, %v650_v20  ;;  %v654_v7 = vadd.f32 %v1444_v47, %v540_v5  ;;  %v542_v9 = vpop.f32.mrb[31].mxu1 }
 0x151   :  { %855 = vst [vmem:[#allocation2 + $0x68] sm:$0xff] %v973_v4  ;;  %v699_v10 = vmul.f32 %v1386_v30, %v652_v23  ;;  %v656_v16 = vadd.f32 %v1447_v51, %v542_v9 }
 0x152   :  { %v742_v11 = vadd.f32 %v1390_v33, %v698_v21  ;;  %v700_v13 = vmul.f32 %v1382_v27, %v654_v7 }
 0x153   :  { %v743_v22 = vadd.f32 %v1394_v37, %v699_v10  ;;  %v701_v24 = vmul.f32 %v1386_v30, %v656_v16 }
 0x154   :  { %v744_v44 = vadd.f32 %v1390_v33, %v700_v13 }
 0x155   :  { %v974_v26 = vpack.c.bf16 %v743_v22, %v742_v11  ;;  %v745_v47 = vadd.f32 %v1394_v37, %v701_v24 }
 0x157   :  { %856 = vst [vmem:[#allocation2 + $0x70] sm:$0xff] %v974_v26  ;;  %v975_v25 = vpack.c.bf16 %v745_v47, %v744_v44 }
 0x159   :  { %857 = vst [vmem:[#allocation2 + $0x78] sm:$0xff] %v975_v25 }
 0x15a   :  { %1113 = shalt.err (!%p1110_p4)
}
 0x15b   :  { %s1114_s13 = scalar_lea.hbm %s1524_s4, 2048 }
 0x15c   :  { %p1115_p5 = scmp.ne.s32.totalorder %s1524_s4, %s1114_s13  ;;  %p1118_p6 = scmp.lt.u32.totalorder %s1114_s13, %s1524_s4 }
 0x15e   :  { %p1120_p7 = pnand %p1118_p6, %p1115_p5 }
 0x160   :  { %1123 = shalt.err (!%p1120_p7)
}
 0x161   :  { %s1129_s18 = smov 128   ;;  %s1130_s19 = smov 8  }
 0x162   :  { %869 = dma.vmem_to_hbm [thread:$0]  %s864_s3, 2048, %s1524_s4, [#allocation3], %s1129_s18, %s1129_s18, %s1130_s19  }
 0x163   :  { %1124 = dma.done.wait [#allocation3], 2048  }
 0x164   :  { %1125 = vsyncadd [#allocation3], 4294965248 }
 0x165   :  { %873 = vsyncpa [#allocation3], 1 }

</bundles_post_ra>
